<compile_context>
chip_gen: v7x
topology: tpu7x:2x2x1
jax: 0.10.0
libtpu: 0.0.40
codegen_flags: <defaults>
</compile_context>

<pallas_src>
import jax
import jax.numpy as jnp
from jax.experimental import pallas as pl
from jax.experimental.pallas import tpu as pltpu


LEAKY_RELU_SLOPE = 0.01  # torch.nn.LeakyReLU default negative_slope
LANE = 128               # TPU lane width


def _round_up(v: int, m: int) -> int:
    return ((v + m - 1) // m) * m


def _make_mlp_kernel(num_linear_layers: int, neg_slope: float):
    """Fused MLP kernel for a fixed number of linear layers.

    Kernel ref layout: (x_ref, w0_ref, b0_ref, w1_ref, b1_ref, ..., o_ref).
    LeakyReLU is applied after every linear except the last (output) layer.
    Matmul inputs are bf16, accumulation and elementwise math are f32.
    """

    def kernel(*refs):
        x_ref = refs[0]
        o_ref = refs[-1]
        h = x_ref[...]  # bf16 row tile
        for i in range(num_linear_layers):
            w_ref = refs[1 + 2 * i]
            b_ref = refs[2 + 2 * i]
            # bf16 x bf16 -> f32 accumulation on the MXU.
            acc = jnp.dot(h, w_ref[...], preferred_element_type=jnp.float32)
            acc = acc + b_ref[...]  # f32 bias add (VPU)
            if i < num_linear_layers - 1:
                # LeakyReLU in f32, then back to bf16 for the next MXU pass.
                acc = jnp.where(acc >= 0, acc, neg_slope * acc)
                h = acc.astype(jnp.bfloat16)
            else:
                h = acc
        # Lane-dense store: the feature dim is padded to a multiple of 128.
        o_ref[...] = h.astype(o_ref.dtype)

    return kernel


def node_network_forward(x, params, *, row_tile: int = 256):
    """Fused NodeNetwork forward pass.

    x:      (..., input_dim) float array.
    params: list of (W, b) with W of shape (in_dim, out_dim) (transposed vs.
            torch.nn.Linear), b of shape (out_dim,).  Last pair = output layer.
    """
    in_dim = x.shape[-1]
    lead_shape = x.shape[:-1]
    n_rows = 1
    for d in lead_shape:
        n_rows *= d

    num_layers = len(params)
    out_dim = params[-1][0].shape[1]
    out_dim_padded = _round_up(out_dim, LANE)

    # Row tile: multiple of 16 sublanes (bf16 packing). For small N use a
    # single tile; for large N use 256-row tiles (pipelined, VMEM-safe on v7x).
    if n_rows <= row_tile:
        row_tile = max(16, _round_up(n_rows, 16))
    n_rows_padded = _round_up(n_rows, row_tile)
    grid = (n_rows_padded // row_tile,)

    x2d = x.reshape(n_rows, in_dim)
    if n_rows_padded != n_rows:
        x2d = jnp.pad(x2d, ((0, n_rows_padded - n_rows), (0, 0)))
    x2d = x2d.astype(jnp.bfloat16)  # cast once in the wrapper

    kernel = _make_mlp_kernel(num_layers, LEAKY_RELU_SLOPE)

    operands = [x2d]
    in_specs = [pl.BlockSpec((row_tile, in_dim), lambda i: (i, 0))]
    for li, (w, b) in enumerate(params):
        if li == num_layers - 1 and out_dim_padded != out_dim:
            # Zero-pad the output layer to 128 lanes for unmasked stores.
            w = jnp.pad(w, ((0, 0), (0, out_dim_padded - out_dim)))
            b = jnp.pad(b, (0, out_dim_padded - out_dim))
        w = w.astype(jnp.bfloat16)                 # cast once, not per grid step
        b2 = b.reshape(1, -1).astype(jnp.float32)  # f32 bias, (1, out_dim)
        operands.append(w)
        in_specs.append(pl.BlockSpec(w.shape, lambda i: (0, 0)))   # VMEM-resident
        operands.append(b2)
        in_specs.append(pl.BlockSpec(b2.shape, lambda i: (0, 0)))  # VMEM-resident

    out = pl.pallas_call(
        kernel,
        out_shape=jax.ShapeDtypeStruct((n_rows_padded, out_dim_padded),
                                       jnp.float32),
        grid=grid,
        in_specs=in_specs,
        out_specs=pl.BlockSpec((row_tile, out_dim_padded), lambda i: (i, 0)),
        compiler_params=pltpu.CompilerParams(
            dimension_semantics=("parallel",)),  # shard row tiles across TCs
    )(*operands)

    return out[:n_rows, :out_dim].reshape(*lead_shape, out_dim)


def init_node_network_params(key, input_dim, output_dim, hidden_dim,
                             num_hidden_layers):
    """Deterministic synthetic parameters matching NodeNetwork.__init__ shapes.

    Returns a list of (W, b) with W stored as (in_dim, out_dim)
    (transpose of torch's (out_dim, in_dim) Linear weight).
    """
    dims = [input_dim] + [hidden_dim] * num_hidden_layers + [output_dim]
    params = []
    for i in range(len(dims) - 1):
        key, kw, kb = jax.random.split(key, 3)
        fan_in = dims[i]
        scale = 1.0 / jnp.sqrt(jnp.float32(fan_in))
        w = jax.random.uniform(kw, (dims[i], dims[i + 1]), jnp.float32,
                               minval=-scale, maxval=scale)
        b = jax.random.uniform(kb, (dims[i + 1],), jnp.float32,
                               minval=-scale, maxval=scale)
        params.append((w, b))
    return params


def _reference_forward(x, params):
    """Pure-JAX f32 reference of the PyTorch forward semantics."""
    h = x.astype(jnp.float32)
    for i, (w, b) in enumerate(params):
        h = h @ w + b
        if i < len(params) - 1:
            h = jnp.where(h >= 0, h, LEAKY_RELU_SLOPE * h)
    return h


if __name__ == "__main__":
    input_dim = 4
    output_dim = 4
    hidden_dim = 32
    num_hidden_layers = 3

    key = jax.random.PRNGKey(0)
    key, kx1, kx2 = jax.random.split(key, 3)
    params = init_node_network_params(key, input_dim, output_dim, hidden_dim,
                                      num_hidden_layers)

    # Case 1: small per-node MLP input (batch=2, nodes=8, input_dim=4).
    x_small = jax.random.normal(kx1, (2, 8, input_dim), dtype=jnp.float32)
    out_small = jax.block_until_ready(node_network_forward(x_small, params))
    ref_small = _reference_forward(x_small, params)
    assert out_small.shape == (2, 8, output_dim)
    # bf16 matmul inputs + f32 accumulation -> loosened tolerance vs f32 ref.
    assert jnp.allclose(out_small, ref_small, atol=5e-2, rtol=5e-2)

    # Case 2: larger row count to exercise the row grid + row padding.
    x_big = jax.random.normal(kx2, (3, 400, input_dim), dtype=jnp.float32)
    out_big = jax.block_until_ready(node_network_forward(x_big, params))
    ref_big = _reference_forward(x_big, params)
    assert out_big.shape == (3, 400, output_dim)
    assert jnp.allclose(out_big, ref_big, atol=5e-2, rtol=5e-2)

    print("KERNEL_OK")
</pallas_src>

<mosaic_0001>
module attributes {stable_mosaic.version = 11 : i64} {
  func.func @kernel(%arg0: i32, %arg1: memref<16x4xbf16, #tpu.memory_space<vmem>>, %arg2: memref<4x32xbf16, #tpu.memory_space<vmem>>, %arg3: memref<1x32xf32, #tpu.memory_space<vmem>>, %arg4: memref<32x32xbf16, #tpu.memory_space<vmem>>, %arg5: memref<1x32xf32, #tpu.memory_space<vmem>>, %arg6: memref<32x32xbf16, #tpu.memory_space<vmem>>, %arg7: memref<1x32xf32, #tpu.memory_space<vmem>>, %arg8: memref<32x128xbf16, #tpu.memory_space<vmem>>, %arg9: memref<1x128xf32, #tpu.memory_space<vmem>>, %arg10: memref<16x128xf32, #tpu.memory_space<vmem>>) attributes {dimension_semantics = [#tpu.dimension_semantics<parallel>], iteration_bounds = array<i64: 1>, scalar_prefetch = 0 : i64, scratch_operands = 0 : i64, tpu.core_type = #tpu.core_type<tc>, window_params = [{transform_indices = @transform_0, window_bounds = array<i64: 16, 4>}, {pipeline_mode = #tpu.pipeline_mode<synchronous>, transform_indices = @transform_1, window_bounds = array<i64: 4, 32>}, {pipeline_mode = #tpu.pipeline_mode<synchronous>, transform_indices = @transform_2, window_bounds = array<i64: 1, 32>}, {pipeline_mode = #tpu.pipeline_mode<synchronous>, transform_indices = @transform_3, window_bounds = array<i64: 32, 32>}, {pipeline_mode = #tpu.pipeline_mode<synchronous>, transform_indices = @transform_4, window_bounds = array<i64: 1, 32>}, {pipeline_mode = #tpu.pipeline_mode<synchronous>, transform_indices = @transform_5, window_bounds = array<i64: 32, 32>}, {pipeline_mode = #tpu.pipeline_mode<synchronous>, transform_indices = @transform_6, window_bounds = array<i64: 1, 32>}, {pipeline_mode = #tpu.pipeline_mode<synchronous>, transform_indices = @transform_7, window_bounds = array<i64: 32, 128>}, {pipeline_mode = #tpu.pipeline_mode<synchronous>, transform_indices = @transform_8, window_bounds = array<i64: 1, 128>}, {transform_indices = @transform_9, window_bounds = array<i64: 16, 128>}]} {
    %c0 = arith.constant 0 : index
    %c0_0 = arith.constant 0 : index
    %0 = vector.load %arg1[%c0, %c0_0] : memref<16x4xbf16, #tpu.memory_space<vmem>>, vector<16x4xbf16>
    %c0_1 = arith.constant 0 : index
    %c0_2 = arith.constant 0 : index
    %1 = vector.load %arg2[%c0_1, %c0_2] : memref<4x32xbf16, #tpu.memory_space<vmem>>, vector<4x32xbf16>
    %cst = arith.constant dense<0.000000e+00> : vector<16x32xf32>
    %2 = tpu.matmul %0, %1, %cst {dimension_numbers = #tpu.dot_dimension_numbers<[1], [0], [0], [1], [0, 0, 1, 1], [], []>} : vector<16x4xbf16>, vector<4x32xbf16>, vector<16x32xf32> -> vector<16x32xf32>
    %c0_3 = arith.constant 0 : index
    %c0_4 = arith.constant 0 : index
    %3 = vector.load %arg3[%c0_3, %c0_4] : memref<1x32xf32, #tpu.memory_space<vmem>>, vector<1x32xf32>
    %4 = vector.broadcast %3 : vector<1x32xf32> to vector<16x32xf32>
    %5 = arith.addf %2, %4 : vector<16x32xf32>
    %cst_5 = arith.constant 0.000000e+00 : f32
    %6 = vector.broadcast %cst_5 : f32 to vector<16x32xf32>
    %7 = arith.cmpf oge, %5, %6 : vector<16x32xf32>
    %cst_6 = arith.constant 0.00999999977 : f32
    %8 = vector.broadcast %cst_6 : f32 to vector<16x32xf32>
    %9 = arith.mulf %8, %5 : vector<16x32xf32>
    %10 = arith.select %7, %5, %9 : vector<16x32xi1>, vector<16x32xf32>
    %11 = arith.truncf %10 : vector<16x32xf32> to vector<16x32xbf16>
    %c0_7 = arith.constant 0 : index
    %c0_8 = arith.constant 0 : index
    %12 = vector.load %arg4[%c0_7, %c0_8] : memref<32x32xbf16, #tpu.memory_space<vmem>>, vector<32x32xbf16>
    %cst_9 = arith.constant dense<0.000000e+00> : vector<16x32xf32>
    %13 = tpu.matmul %11, %12, %cst_9 {dimension_numbers = #tpu.dot_dimension_numbers<[1], [0], [0], [1], [0, 0, 1, 1], [], []>} : vector<16x32xbf16>, vector<32x32xbf16>, vector<16x32xf32> -> vector<16x32xf32>
    %c0_10 = arith.constant 0 : index
    %c0_11 = arith.constant 0 : index
    %14 = vector.load %arg5[%c0_10, %c0_11] : memref<1x32xf32, #tpu.memory_space<vmem>>, vector<1x32xf32>
    %15 = vector.broadcast %14 : vector<1x32xf32> to vector<16x32xf32>
    %16 = arith.addf %13, %15 : vector<16x32xf32>
    %cst_12 = arith.constant 0.000000e+00 : f32
    %17 = vector.broadcast %cst_12 : f32 to vector<16x32xf32>
    %18 = arith.cmpf oge, %16, %17 : vector<16x32xf32>
    %cst_13 = arith.constant 0.00999999977 : f32
    %19 = vector.broadcast %cst_13 : f32 to vector<16x32xf32>
    %20 = arith.mulf %19, %16 : vector<16x32xf32>
    %21 = arith.select %18, %16, %20 : vector<16x32xi1>, vector<16x32xf32>
    %22 = arith.truncf %21 : vector<16x32xf32> to vector<16x32xbf16>
    %c0_14 = arith.constant 0 : index
    %c0_15 = arith.constant 0 : index
    %23 = vector.load %arg6[%c0_14, %c0_15] : memref<32x32xbf16, #tpu.memory_space<vmem>>, vector<32x32xbf16>
    %cst_16 = arith.constant dense<0.000000e+00> : vector<16x32xf32>
    %24 = tpu.matmul %22, %23, %cst_16 {dimension_numbers = #tpu.dot_dimension_numbers<[1], [0], [0], [1], [0, 0, 1, 1], [], []>} : vector<16x32xbf16>, vector<32x32xbf16>, vector<16x32xf32> -> vector<16x32xf32>
    %c0_17 = arith.constant 0 : index
    %c0_18 = arith.constant 0 : index
    %25 = vector.load %arg7[%c0_17, %c0_18] : memref<1x32xf32, #tpu.memory_space<vmem>>, vector<1x32xf32>
    %26 = vector.broadcast %25 : vector<1x32xf32> to vector<16x32xf32>
    %27 = arith.addf %24, %26 : vector<16x32xf32>
    %cst_19 = arith.constant 0.000000e+00 : f32
    %28 = vector.broadcast %cst_19 : f32 to vector<16x32xf32>
    %29 = arith.cmpf oge, %27, %28 : vector<16x32xf32>
    %cst_20 = arith.constant 0.00999999977 : f32
    %30 = vector.broadcast %cst_20 : f32 to vector<16x32xf32>
    %31 = arith.mulf %30, %27 : vector<16x32xf32>
    %32 = arith.select %29, %27, %31 : vector<16x32xi1>, vector<16x32xf32>
    %33 = arith.truncf %32 : vector<16x32xf32> to vector<16x32xbf16>
    %c0_21 = arith.constant 0 : index
    %c0_22 = arith.constant 0 : index
    %34 = vector.load %arg8[%c0_21, %c0_22] : memref<32x128xbf16, #tpu.memory_space<vmem>>, vector<32x128xbf16>
    %cst_23 = arith.constant dense<0.000000e+00> : vector<16x128xf32>
    %35 = tpu.matmul %33, %34, %cst_23 {dimension_numbers = #tpu.dot_dimension_numbers<[1], [0], [0], [1], [0, 0, 1, 1], [], []>} : vector<16x32xbf16>, vector<32x128xbf16>, vector<16x128xf32> -> vector<16x128xf32>
    %c0_24 = arith.constant 0 : index
    %c0_25 = arith.constant 0 : index
    %36 = vector.load %arg9[%c0_24, %c0_25] : memref<1x128xf32, #tpu.memory_space<vmem>>, vector<1x128xf32>
    %37 = vector.broadcast %36 : vector<1x128xf32> to vector<16x128xf32>
    %38 = arith.addf %35, %37 : vector<16x128xf32>
    %c0_26 = arith.constant 0 : index
    %c0_27 = arith.constant 0 : index
    %39 = vector.load %arg10[%c0_26, %c0_27] : memref<16x128xf32, #tpu.memory_space<vmem>>, vector<16x128xf32>
    tpu.vector_store %arg10[%c0_26, %c0_27], %38 {strides = array<i32>} : memref<16x128xf32, #tpu.memory_space<vmem>>, vector<16x128xf32>,
    return
  }
  func.func @transform_0(%arg0: i32) -> (i32, i32) {
    %c0_i32 = arith.constant 0 : i32
    %c0_i32_0 = arith.constant 0 : i32
    return %arg0, %c0_i32 : i32, i32
  }
  func.func @transform_1(%arg0: i32) -> (i32, i32) {
    %c0_i32 = arith.constant 0 : i32
    %c0_i32_0 = arith.constant 0 : i32
    %c0_i32_1 = arith.constant 0 : i32
    return %c0_i32, %c0_i32_0 : i32, i32
  }
  func.func @transform_2(%arg0: i32) -> (i32, i32) {
    %c0_i32 = arith.constant 0 : i32
    %c0_i32_0 = arith.constant 0 : i32
    %c0_i32_1 = arith.constant 0 : i32
    return %c0_i32, %c0_i32_0 : i32, i32
  }
  func.func @transform_3(%arg0: i32) -> (i32, i32) {
    %c0_i32 = arith.constant 0 : i32
    %c0_i32_0 = arith.constant 0 : i32
    %c0_i32_1 = arith.constant 0 : i32
    return %c0_i32, %c0_i32_0 : i32, i32
  }
  func.func @transform_4(%arg0: i32) -> (i32, i32) {
    %c0_i32 = arith.constant 0 : i32
    %c0_i32_0 = arith.constant 0 : i32
    %c0_i32_1 = arith.constant 0 : i32
    return %c0_i32, %c0_i32_0 : i32, i32
  }
  func.func @transform_5(%arg0: i32) -> (i32, i32) {
    %c0_i32 = arith.constant 0 : i32
    %c0_i32_0 = arith.constant 0 : i32
    %c0_i32_1 = arith.constant 0 : i32
    return %c0_i32, %c0_i32_0 : i32, i32
  }
  func.func @transform_6(%arg0: i32) -> (i32, i32) {
    %c0_i32 = arith.constant 0 : i32
    %c0_i32_0 = arith.constant 0 : i32
    %c0_i32_1 = arith.constant 0 : i32
    return %c0_i32, %c0_i32_0 : i32, i32
  }
  func.func @transform_7(%arg0: i32) -> (i32, i32) {
    %c0_i32 = arith.constant 0 : i32
    %c0_i32_0 = arith.constant 0 : i32
    %c0_i32_1 = arith.constant 0 : i32
    return %c0_i32, %c0_i32_0 : i32, i32
  }
  func.func @transform_8(%arg0: i32) -> (i32, i32) {
    %c0_i32 = arith.constant 0 : i32
    %c0_i32_0 = arith.constant 0 : i32
    %c0_i32_1 = arith.constant 0 : i32
    return %c0_i32, %c0_i32_0 : i32, i32
  }
  func.func @transform_9(%arg0: i32) -> (i32, i32) {
    %c0_i32 = arith.constant 0 : i32
    %c0_i32_0 = arith.constant 0 : i32
    return %arg0, %c0_i32 : i32, i32
  }
}

</mosaic_0001>

<bundles_post_ra>
// kernel: tpu_custom_call.1
= control target key start
LH: loop header
LB: loop body
LE: loop exit
PB: predicated region body
PF: predicated region fallthrough
CT: control target
= control target key end

     0   :  { %14 = vsyncpa [#allocation3], 0  ;;  %s783_s0 = inlined_call_operand.vmem [shape: bf16[16,4], index: 0, kind: input, shape index: {}]   ;;  %s784_s1 = inlined_call_operand.hbm [shape: bf16[4,32], index: 1, kind: input, shape index: {}]   ;;  %s785_s2 = inlined_call_operand.hbm [shape: f32[1,32], index: 2, kind: input, shape index: {}]   ;;  %s786_s3 = inlined_call_operand.vmem [shape: bf16[32,32], index: 3, kind: input, shape index: {}]   ;;  %s787_s4 = inlined_call_operand.hbm [shape: f32[1,32], index: 4, kind: input, shape index: {}]   ;;  %s788_s5 = inlined_call_operand.hbm [shape: bf16[32,32], index: 5, kind: input, shape index: {}]   ;;  %s789_s6 = inlined_call_operand.hbm [shape: f32[1,32], index: 6, kind: input, shape index: {}]   ;;  %s790_s7 = inlined_call_operand.vmem [shape: bf16[32,128], index: 7, kind: input, shape index: {}]   ;;  %s791_s8 = inlined_call_operand.vmem [shape: f32[1,128], index: 8, kind: input, shape index: {}]   ;;  %s792_s9 = inlined_call_operand.hbm [shape: f32[16,128], index: 9, kind: output, shape index: {}]  }
   0x1   :  { %15 = vsyncpa [#allocation6], 0 }
   0x2   :  { %16 = vsyncpa [#allocation9], 0 }
   0x3   :  { %17 = vsyncpa [#allocation4], 0  ;;  %s617_s30 = smov [#allocation5]   ;;  %s618_s11 = smov [#allocation8]  }
   0x4   :  { %s36_s10 = sshll.u32 %s617_s30, 4  ;;  %s57_s12 = sshll.u32 %s618_s11, 4  ;;  %s37_s10 = int_to_ptr.vmem [resolvable:$true] %s36_s10  ;;  %s679_s12 = int_to_ptr.vmem [resolvable:$true] %s57_s12 }
   0x5   :  { %s477_s15 = scalar_lea.hbm %s785_s2, 16 }
   0x6   :  { %p478_p0 = scmp.ne.s32.totalorder %s785_s2, %s477_s15  ;;  %p481_p1 = scmp.lt.u32.totalorder %s477_s15, %s785_s2 }
   0x8   :  { %p483_p2 = pnand %p481_p1, %p478_p0 }
   0xa   :  { %486 = shalt.err (!%p483_p2)
}
   0xb   :  { %s487_s20 = scalar_lea.vmem %s37_s10, 16  ;;  %s491_s21 = scalar_lea.vmem %s37_s10, 32 }
   0xc   :  { %p488_p3 = scmp.ne.s32.totalorder %s37_s10, %s487_s20  ;;  %p492_p4 = scmp.lt.s32.totalorder %s37_s10, %s37_s10 }
   0xd   :  { %p493_p5 = scmp.lt.s32.totalorder %s491_s21, %s487_s20 }
   0xf   :  { %p494_p6 = por %p493_p5, %p492_p4 }
  0x11   :  { %p495_p7 = pnand %p494_p6, %p488_p3 }
  0x13   :  { %498 = shalt.err (!%p495_p7)
}
  0x14   :  { %39 = dma.hbm_to_vmem [thread:$0]  %s785_s2, 16, %s37_s10, [#allocation6]  }
  0x15   :  { %s499_s26 = scalar_lea.hbm %s788_s5, 256 }
  0x16   :  { %p500_p8 = scmp.ne.s32.totalorder %s788_s5, %s499_s26  ;;  %p503_p9 = scmp.lt.u32.totalorder %s499_s26, %s788_s5 }
  0x18   :  { %p505_p10 = pnand %p503_p9, %p500_p8 }
  0x1a   :  { %508 = shalt.err (!%p505_p10)
}
  0x1b   :  { %s509_s11 = scalar_lea.vmem %s679_s12, 256  ;;  %p514_p12 = scmp.lt.s32.totalorder %s679_s12, %s679_s12 }
  0x1c   :  { %p510_p11 = scmp.ne.s32.totalorder %s679_s12, %s509_s11  ;;  %p515_p13 = scmp.lt.s32.totalorder %s509_s11, %s509_s11 }
  0x1e   :  { %p516_p0 = por %p515_p13, %p514_p12 }
  0x20   :  { %p517_p1 = pnand %p516_p0, %p510_p11 }
  0x22   :  { %520 = shalt.err (!%p517_p1)
}
  0x23   :  { %s619_s2 = smov 64   ;;  %s620_s10 = smov 4  }
  0x24   :  { %63 = dma.hbm_to_vmem [thread:$0]  %s788_s5, 256, %s679_s12, [#allocation9], %s619_s2, %s619_s2, %s620_s10  }
  0x25   :  { %s621_s15 = smov [#allocation2]   ;;  %s622_s17 = smov [#allocation7]  }
  0x26   :  { %s26_s16 = sshll.u32 %s621_s15, 4  ;;  %s48_s18 = sshll.u32 %s622_s17, 4  ;;  %s27_s16 = int_to_ptr.vmem [resolvable:$true] %s26_s16  ;;  %s49_s18 = int_to_ptr.vmem [resolvable:$true] %s48_s18 }
  0x27   :  { %s521_s21 = scalar_lea.hbm %s784_s1, 32 }
  0x28   :  { %p522_p2 = scmp.ne.s32.totalorder %s784_s1, %s521_s21  ;;  %p525_p3 = scmp.lt.u32.totalorder %s521_s21, %s784_s1 }
  0x2a   :  { %p527_p4 = pnand %p525_p3, %p522_p2 }
  0x2c   :  { %530 = shalt.err (!%p527_p4)
}
  0x2d   :  { %s531_s5 = scalar_lea.vmem %s27_s16, 32  ;;  %p536_p6 = scmp.lt.s32.totalorder %s27_s16, %s27_s16 }
  0x2e   :  { %p532_p5 = scmp.ne.s32.totalorder %s27_s16, %s531_s5  ;;  %p537_p7 = scmp.lt.s32.totalorder %s531_s5, %s531_s5 }
  0x30   :  { %p538_p8 = por %p537_p7, %p536_p6 }
  0x32   :  { %p539_p9 = pnand %p538_p8, %p532_p5 }
  0x34   :  { %542 = shalt.err (!%p539_p9)
}
  0x35   :  { %29 = dma.hbm_to_vmem [thread:$0]  %s784_s1, 32, %s27_s16, [#allocation3]  }
  0x36   :  { %s543_s29 = scalar_lea.hbm %s787_s4, 16 }
  0x37   :  { %p544_p10 = scmp.ne.s32.totalorder %s787_s4, %s543_s29  ;;  %p547_p11 = scmp.lt.u32.totalorder %s543_s29, %s787_s4 }
  0x39   :  { %p549_p12 = pnand %p547_p11, %p544_p10 }
  0x3b   :  { %552 = shalt.err (!%p549_p12)
}
  0x3c   :  { %s553_s13 = scalar_lea.vmem %s49_s18, 16  ;;  %s557_s14 = scalar_lea.vmem %s49_s18, 32 }
  0x3d   :  { %p554_p13 = scmp.ne.s32.totalorder %s49_s18, %s553_s13  ;;  %p558_p0 = scmp.lt.s32.totalorder %s49_s18, %s49_s18 }
  0x3e   :  { %p559_p1 = scmp.lt.s32.totalorder %s557_s14, %s553_s13 }
  0x40   :  { %p560_p2 = por %p559_p1, %p558_p0 }
  0x42   :  { %p561_p3 = pnand %p560_p2, %p554_p13 }
  0x44   :  { %564 = shalt.err (!%p561_p3)
}
  0x45   :  { %51 = dma.hbm_to_vmem [thread:$0]  %s787_s4, 16, %s49_s18, [#allocation6]  }
  0x46   :  { %s623_s16 = smov [#allocation10]   ;;  %s565_s21 = scalar_lea.hbm %s789_s6, 16 }
  0x47   :  { %s70_s17 = sshll.u32 %s623_s16, 4  ;;  %p566_p4 = scmp.ne.s32.totalorder %s789_s6, %s565_s21  ;;  %s71_s17 = int_to_ptr.vmem [resolvable:$true] %s70_s17 }
  0x48   :  { %p569_p5 = scmp.lt.u32.totalorder %s565_s21, %s789_s6 }
  0x4a   :  { %p571_p6 = pnand %p569_p5, %p566_p4 }
  0x4c   :  { %574 = shalt.err (!%p571_p6)
}
  0x4d   :  { %s575_s5 = scalar_lea.vmem %s71_s17, 16  ;;  %s579_s4 = scalar_lea.vmem %s71_s17, 32 }
  0x4e   :  { %p576_p7 = scmp.ne.s32.totalorder %s71_s17, %s575_s5  ;;  %p580_p8 = scmp.lt.s32.totalorder %s71_s17, %s71_s17 }
  0x4f   :  { %p581_p9 = scmp.lt.s32.totalorder %s579_s4, %s575_s5 }
  0x51   :  { %p582_p10 = por %p581_p9, %p580_p8 }
  0x53   :  { %p583_p11 = pnand %p582_p10, %p576_p7 }
  0x55   :  { %586 = shalt.err (!%p583_p11)
}
  0x56   :  { %73 = dma.hbm_to_vmem [thread:$0]  %s789_s6, 16, %s71_s17, [#allocation9]  }
  0x57   :  { %609 = dma.done.wait [#allocation3], 32  }
  0x58   :  { %610 = vsyncadd [#allocation3], 4294967264 }
  0x59   :  { %611 = dma.done.wait [#allocation6], 32  }
  0x5a   :  { %612 = vsyncadd [#allocation6], 4294967264 }
  0x5b   :  { %613 = dma.done.wait [#allocation9], 272  }
  0x5c   :  { %614 = vsyncadd [#allocation9], 4294967024  ;;  %v624_v0 = vmov 0.0   ;;  %vm625_vm0 = vmmov 0   ;;  %vm113_vm1 = vcmask 1041408   ;;  %v470_v3 = vld [vmem:[%s783_s0] sm:$0xff]  }
  0x5d   :  { %428 = vmatprep.subr.bf16.mxu0 %v624_v0  ;;  %430 = vmatprep.mubr.msk.bf16.mxu0 %vm625_vm0, %v624_v0  ;;  %v96_v1 = vld [vmem:[#allocation2] sm:$0x3]  ;;  %vm109_vm2 = vcmask 31744   ;;  %v471_v4 = vld [vmem:[%s786_s3] sm:$0xff]   ;;  %v402_v6 = vld [vmem:[#allocation5] ss:$0 sm:$0xff] }
  0x5e   :  { %434 = vmatprep.subr.bf16.mxu1 %v624_v0  ;;  %438 = vmatprep.mubr.msk.bf16.mxu1 %vm625_vm0, %v624_v0  ;;  %v115_v2 = vsel %vm113_vm1, %v96_v1, 0  ;;  %v472_v5 = vld [vmem:[%s786_s3 + $0x8] sm:$0xff]   ;;  %vm188_vm5 = vcmask 261120   ;;  %v474_v19 = vld [vmem:[#allocation8 + $0x8] sm:$0xff]   ;;  %v475_v32 = vld [vmem:[%s790_s7] sm:$0xff]  }
  0x5f   :  { %429 = vmatpush3.bf16.msra.mxu0 %v115_v2  ;;  %435 = vmatpush3.bf16.msra.mxu1 %v471_v4  ;;  %v473_v18 = vld [vmem:[#allocation8] sm:$0xff]   ;;  %v405_v20 = vld [vmem:[#allocation7] ss:$0 sm:$0xff]  ;;  %v409_v34 = vld [vmem:[#allocation10] ss:$0 sm:$0xff] }
  0x60   :  { %442 = vmatprep.subr.bf16.mxu0 %v624_v0  ;;  %436 = vmatprep.subr.bf16.mxu1 %v624_v0  ;;  %v476_v33 = vld [vmem:[%s790_s7 + $0x8] sm:$0xff]   ;;  %v413_v46 = vld [vmem:[%s791_s8] ss:$0 sm:$0xff]  ;;  %s626_s7 = smov [#allocation11]  }
  0x61   :  { %s388_s14 = sshll.u32 %s626_s7, 4  ;;  %s389_s14 = int_to_ptr.vmem [resolvable:$true] %s388_s14 }
  0x62   :  { %431 = vmatmul.mubr.msk.bf16.vlgmr.msra.gmra.mrb[0].mxu0 %vm109_vm2, %v470_v3  ;;  %s587_s1 = scalar_lea.vmem %s389_s14, 256  ;;  %p592_p13 = scmp.lt.s32.totalorder %s389_s14, %s389_s14 }
  0x63   :  { %446 = vmatprep.mubr.msk.bf16.mxu0 %vm625_vm0, %v624_v0  ;;  %437 = vmatpush3.bf16.msra.mxu1 %v472_v5  ;;  %p588_p12 = scmp.ne.s32.totalorder %s389_s14, %s587_s1  ;;  %p593_p0 = scmp.lt.s32.totalorder %s587_s1, %s587_s1 }
  0x64   :  { %450 = vmatprep.subr.bf16.mxu1 %v624_v0  ;;  %443 = vmatpush3.bf16.msra.mxu0 %v473_v18 }
  0x65   :  { %444 = vmatprep.subr.bf16.mxu0 %v624_v0  ;;  %p594_p1 = por %p593_p0, %p592_p13 }
  0x67   :  { %p595_p2 = pnand %p594_p1, %p588_p12 }
  0x68   :  { %445 = vmatpush3.bf16.msra.mxu0 %v474_v19 }
 0x135   :  { %v151_v7 = vpop.f32.mrb[0].mxu0 }
 0x136   :  { %v152_v8 = vadd.f32 %v402_v6, %v151_v7  ;;  %v432_v9 = vpop.f32.mrb[1].mxu0 }
 0x137   :  { %v154_v10 = vpop.f32.mrb[2].mxu0 }
 0x138   :  { %v160_v11 = vmul.f32 0.01, %v152_v8  ;;  %v155_v12 = vadd.f32 %v402_v6, %v154_v10  ;;  %v433_v13 = vpop.f32.mrb[3].mxu0  ;;  %vm158_vm3 = vcmp.ge.f32.partialorder %v152_v8, 0.0 }
 0x13a   :  { %vm159_vm4 = vcmp.ge.f32.partialorder %v155_v12, 0.0  ;;  %v161_v14 = vmul.f32 0.01, %v155_v12  ;;  %v162_v15 = vsel %vm158_vm3, %v152_v8, %v160_v11 }
 0x13c   :  { %v163_v16 = vsel %vm159_vm4, %v155_v12, %v161_v14 }
 0x13d   :  { %v164_v17 = vpack.c.bf16 %v163_v16, %v162_v15 }
 0x13f   :  { %439 = vmatmul.mubr.msk.bf16.vlgmr.msra.gmra.mrb[0].mxu1 %vm188_vm5, %v164_v17 }
 0x140   :  { %454 = vmatprep.mubr.msk.bf16.mxu1 %vm625_vm0, %v624_v0  ;;  %451 = vmatpush3.bf16.msra.mxu1 %v475_v32 }
 0x141   :  { %452 = vmatprep.subr.bf16.mxu1 %v624_v0 }
 0x144   :  { %453 = vmatpush3.bf16.msra.mxu1 %v476_v33 }
 0x212   :  { %v226_v21 = vpop.f32.mrb[0].mxu1 }
 0x213   :  { %v227_v22 = vadd.f32 %v405_v20, %v226_v21  ;;  %v440_v23 = vpop.f32.mrb[1].mxu1 }
 0x214   :  { %v229_v24 = vpop.f32.mrb[2].mxu1 }
 0x215   :  { %v235_v25 = vmul.f32 0.01, %v227_v22  ;;  %v230_v26 = vadd.f32 %v405_v20, %v229_v24  ;;  %v441_v27 = vpop.f32.mrb[3].mxu1  ;;  %vm233_vm6 = vcmp.ge.f32.partialorder %v227_v22, 0.0 }
 0x217   :  { %vm234_vm7 = vcmp.ge.f32.partialorder %v230_v26, 0.0  ;;  %v236_v28 = vmul.f32 0.01, %v230_v26  ;;  %v237_v29 = vsel %vm233_vm6, %v227_v22, %v235_v25 }
 0x219   :  { %v238_v30 = vsel %vm234_vm7, %v230_v26, %v236_v28 }
 0x21a   :  { %v239_v31 = vpack.c.bf16 %v238_v30, %v237_v29 }
 0x21c   :  { %447 = vmatmul.mubr.msk.bf16.vlgmr.msra.gmra.mrb[4].mxu0 %vm188_vm5, %v239_v31 }
 0x2ef   :  { %v300_v35 = vpop.f32.mrb[4].mxu0 }
 0x2f0   :  { %v301_v36 = vadd.f32 %v409_v34, %v300_v35  ;;  %v448_v37 = vpop.f32.mrb[5].mxu0 }
 0x2f1   :  { %v303_v38 = vpop.f32.mrb[6].mxu0 }
 0x2f2   :  { %v309_v39 = vmul.f32 0.01, %v301_v36  ;;  %v304_v40 = vadd.f32 %v409_v34, %v303_v38  ;;  %v449_v41 = vpop.f32.mrb[7].mxu0  ;;  %vm307_vm8 = vcmp.ge.f32.partialorder %v301_v36, 0.0 }
 0x2f4   :  { %vm308_vm9 = vcmp.ge.f32.partialorder %v304_v40, 0.0  ;;  %v310_v42 = vmul.f32 0.01, %v304_v40  ;;  %v311_v43 = vsel %vm307_vm8, %v301_v36, %v309_v39 }
 0x2f6   :  { %v312_v44 = vsel %vm308_vm9, %v304_v40, %v310_v42 }
 0x2f7   :  { %v313_v45 = vpack.c.bf16 %v312_v44, %v311_v43 }
 0x2f9   :  { %455 = vmatmul.mubr.msk.bf16.vlgmr.msra.gmra.mrb[4].mxu1 %vm188_vm5, %v313_v45 }
 0x3cc   :  { %v374_v47 = vpop.f32.mrb[4].mxu1 }
 0x3cd   :  { %v375_v48 = vadd.f32 %v413_v46, %v374_v47  ;;  %v456_v49 = vpop.f32.mrb[5].mxu1 }
 0x3ce   :  { %v377_v50 = vpop.f32.mrb[6].mxu1 }
 0x3cf   :  { %381 = vst [vmem:[#allocation11] sm:$0xff] %v375_v48  ;;  %v378_v51 = vadd.f32 %v413_v46, %v377_v50  ;;  %v457_v52 = vpop.f32.mrb[7].mxu1 }
 0x3d1   :  { %382 = vst [vmem:[#allocation11 + $0x8] sm:$0xff] %v378_v51 }
 0x3d2   :  { %598 = shalt.err (!%p595_p2)
}
 0x3d3   :  { %s599_s16 = scalar_lea.hbm %s792_s9, 256 }
 0x3d4   :  { %p600_p3 = scmp.ne.s32.totalorder %s792_s9, %s599_s16  ;;  %p603_p4 = scmp.lt.u32.totalorder %s599_s16, %s792_s9 }
 0x3d6   :  { %p605_p5 = pnand %p603_p4, %p600_p3 }
 0x3d8   :  { %608 = shalt.err (!%p605_p5)
}
 0x3d9   :  { %s627_s22 = smov 128   ;;  %s628_s23 = smov 8  }
 0x3da   :  { %394 = dma.vmem_to_hbm [thread:$0]  %s389_s14, 256, %s792_s9, [#allocation4], %s627_s22, %s627_s22, %s628_s23  }
 0x3db   :  { %615 = dma.done.wait [#allocation4], 256  }
 0x3dc   :  { %616 = vsyncadd [#allocation4], 4294967040 }
 0x3dd   :  { %398 = vsyncpa [#allocation3], 1 }
 0x3de   :  { %399 = vsyncpa [#allocation6], 1 }
 0x3df   :  { %400 = vsyncpa [#allocation9], 1 }
 0x3e0   :  { %401 = vsyncpa [#allocation4], 1 }

</bundles_post_ra>
